<compile_context>
chip_gen: v5e
topology: v5e:2x2
jax: 0.10.0
libtpu: 0.0.40
codegen_flags: <defaults>
</compile_context>

<pallas_src>
import functools
import math

import jax
import jax.numpy as jnp
from jax.experimental import pallas as pl
from jax.experimental.pallas import tpu as pltpu


def _round_up(x, m):
    return ((x + m - 1) // m) * m


def _cdiv(a, b):
    return (a + b - 1) // b


# ----------------------------- Pallas kernel --------------------------------
def supermask_mlp_kernel(z_ref, w_ref, b_ref, o_ref, *, n_layers, use_sigmoid):
    # z_ref: (tb, D) bf16  (zero-padded lanes beyond the real input width)
    # w_ref: (n_layers, D, D) bf16, mask already folded in, (in, out) layout
    # b_ref: (n_layers, D) f32, zero-padded lanes beyond each layer's width
    # o_ref: (tb, D) f32, lane-dense; wrapper slices [:, :x_dim]
    h = z_ref[...]                                            # bf16 activations
    for li in range(n_layers):                                # unrolled (4 layers)
        y = jax.lax.dot_general(h, w_ref[li],                 # (M,K)@(K,N) on MXU
                                (((1,), (0,)), ((), ())),
                                preferred_element_type=jnp.float32)
        y = y + b_ref[li:li + 1, :]                           # f32 bias add, broadcasts
        if li < n_layers - 1:
            h = jnp.maximum(y, 0.0).astype(jnp.bfloat16)      # ReLU, carry bf16
        else:
            h = y                                             # last layer stays f32
    if use_sigmoid:
        h = jax.nn.sigmoid(h)
    o_ref[...] = h.astype(o_ref.dtype)                        # lane-dense store


# --------------------------- parameter packing -------------------------------
def pack_params(params):
    """params: list of (weight (out,in), mask (out,in), bias (out,)) tuples
    ordered fc4, fc3, fc2, fc1 (the module's forward order).
    Returns (w_slab (L,D,D) bf16, b_slab (L,D) f32, D).  Do this ONCE and reuse."""
    dims = []
    for (w, _, _) in params:
        dims += [w.shape[0], w.shape[1]]
    D = _round_up(max(dims + [128]), 128)
    # TODO(synk): for hidden dims >~2K the all-resident (L,D,D) slab should be
    # single-buffered (pipeline_mode=pl.Buffered(1) on the pinned specs), have
    # vmem_limit_bytes raised, or be tiled over out_features with an extra grid
    # axis (v7x VMEM = 64 MiB).
    ws, bs = [], []
    for (w, m, b) in params:
        wt = (w * m).T.astype(jnp.bfloat16)                   # fold mask, (in, out)
        ws.append(jnp.pad(wt, ((0, D - wt.shape[0]), (0, D - wt.shape[1]))))
        bs.append(jnp.pad(b.astype(jnp.float32), (0, D - b.shape[0])))
    return jnp.stack(ws), jnp.stack(bs), D


def _choose_batch_tiling(batch, max_tile):
    """Pick (tb, batch_pad): tb a multiple of 16 (bf16 sublane packing), waste
    capped to <16 rows/tile, and >=2 parallel tiles for large batches so v7x's
    second TensorCore gets work."""
    b = _round_up(batch, 16)
    if b < 256:                       # too little work to split across cores
        return b, b
    n_tiles = max(2, _cdiv(b, max_tile))
    tb = _round_up(_cdiv(b, n_tiles), 16)
    return tb, tb * n_tiles


# ------------------------------ forward wrapper -------------------------------
def supermask_generator_forward(z, w_slab, b_slab, *, x_dim, use_sigmoid,
                                max_batch_tile=512):
    n_layers, D, _ = w_slab.shape
    batch = z.shape[0]
    tb, batch_pad = _choose_batch_tiling(batch, max_batch_tile)

    # pad batch to the tiling, pad z lanes to D with zeros, stream as bf16
    zp = jnp.zeros((batch_pad, D), jnp.bfloat16)
    zp = zp.at[:batch, :z.shape[1]].set(z.astype(jnp.bfloat16))

    kernel = functools.partial(supermask_mlp_kernel,
                               n_layers=n_layers, use_sigmoid=use_sigmoid)
    out = pl.pallas_call(
        kernel,
        out_shape=jax.ShapeDtypeStruct((batch_pad, D), jnp.float32),
        grid_spec=pltpu.PrefetchScalarGridSpec(
            num_scalar_prefetch=0,
            grid=(batch_pad // tb,),
            in_specs=[
                pl.BlockSpec((tb, D), lambda i: (i, 0)),              # z tile
                pl.BlockSpec((n_layers, D, D), lambda i: (0, 0, 0)),  # weights (pinned)
                pl.BlockSpec((n_layers, D), lambda i: (0, 0)),        # biases (pinned)
            ],
            out_specs=pl.BlockSpec((tb, D), lambda i: (i, 0)),        # lane-dense
        ),
        compiler_params=pltpu.CompilerParams(
            dimension_semantics=("parallel",)),                       # v7x: 2 TCs
    )(zp, w_slab, b_slab)
    # padded output lanes contain sigmoid(0)=0.5 / bias leftovers: always slice.
    return out[:batch, :x_dim]


# --------------------------- parameter setup (glue) --------------------------
def get_subnet_mask(scores, sparsity):
    """GetSubnet.forward semantics: zero the smallest `sparsity` fraction of
    |scores|, set the rest to 1 (module calls it with k = 1 - sparsity, so
    j = int((1 - k) * numel) = int(sparsity * numel))."""
    flat = jnp.abs(scores).reshape(-1)
    n = flat.shape[0]
    j = int(sparsity * n)
    order = jnp.argsort(flat)   # TODO(synk): global top-k sort has no clean Pallas equivalent; done once in plain JAX
    mask = jnp.zeros((n,), jnp.float32).at[order[j:]].set(1.0)
    return mask.reshape(scores.shape)


def init_linear(key, out_f, in_f, supermask, sparsity):
    """Deterministic init mimicking the module's __init__ (shapes are what matter)."""
    kw, kb, ks = jax.random.split(key, 3)
    if supermask:
        # kaiming_normal_(weight, fan_in, relu): std = sqrt(2 / fan_in)
        w = jax.random.normal(kw, (out_f, in_f), jnp.float32) * math.sqrt(2.0 / in_f)
        # kaiming_uniform_(scores, a=sqrt(5)): bound = sqrt(1 / fan_in)
        bound_s = math.sqrt(1.0 / in_f)
        scores = jax.random.uniform(ks, (out_f, in_f), jnp.float32, -bound_s, bound_s)
        mask = get_subnet_mask(scores, sparsity)
    else:
        # nn.Linear default: uniform(-1/sqrt(fan_in), 1/sqrt(fan_in))
        bound = 1.0 / math.sqrt(in_f)
        w = jax.random.uniform(kw, (out_f, in_f), jnp.float32, -bound, bound)
        mask = jnp.ones((out_f, in_f), jnp.float32)
    bound_b = 1.0 / math.sqrt(in_f)
    b = jax.random.uniform(kb, (out_f,), jnp.float32, -bound_b, bound_b)
    return (w, mask, b)


# ------------------------------- references -----------------------------------
def reference_forward_f32(z, params, use_sigmoid):
    """PyTorch-semantics reference, full f32."""
    h = z
    for i, (w, m, b) in enumerate(params):
        h = h @ (w * m).T + b
        if i < len(params) - 1:
            h = jnp.maximum(h, 0.0)
    if use_sigmoid:
        h = jax.nn.sigmoid(h)
    return h


def reference_forward_bf16(z, params, use_sigmoid):
    """Same numerics as the kernel: bf16 matmul operands, f32 accumulation."""
    h = z.astype(jnp.float32)
    for i, (w, m, b) in enumerate(params):
        wt = (w * m).T.astype(jnp.bfloat16)
        h = jax.lax.dot_general(h.astype(jnp.bfloat16), wt,
                                (((1,), (0,)), ((), ())),
                                preferred_element_type=jnp.float32) + b
        if i < len(params) - 1:
            h = jnp.maximum(h, 0.0)
    if use_sigmoid:
        h = jax.nn.sigmoid(h)
    return h


# --------------------------------- main ---------------------------------------
if __name__ == "__main__":
    # small shapes consistent with the MLP generator
    batch = 8
    x_dim, h_dim1, h_dim2, h_dim3, h_dim4 = 32, 64, 48, 40, 16
    weights_to_prune = "57"       # fc4 ('5') and fc2 ('7') are Supermask_Linear
    sparsity = 0.5
    use_sigmoid = True

    key = jax.random.PRNGKey(0)
    kz, k4, k3, k2, k1 = jax.random.split(key, 5)

    # layer order matches forward: fc4 (h4->h3), fc3 (h3->h2), fc2 (h2->h1), fc1 (h1->x)
    params = [
        init_linear(k4, h_dim3, h_dim4, "5" in weights_to_prune, sparsity),
        init_linear(k3, h_dim2, h_dim3, "6" in weights_to_prune, sparsity),
        init_linear(k2, h_dim1, h_dim2, "7" in weights_to_prune, sparsity),
        init_linear(k1, x_dim, h_dim1, "8" in weights_to_prune, sparsity),
    ]

    z = jax.random.normal(kz, (batch, h_dim4), jnp.float32)

    # pack once (mask fold / transpose / pad amortized out of the per-call path)
    w_slab, b_slab, _ = pack_params(params)

    out = supermask_generator_forward(z, w_slab, b_slab,
                                      x_dim=x_dim, use_sigmoid=use_sigmoid)
    out = jax.block_until_ready(out)
    assert out.shape == (batch, x_dim)

    # tight check against a reference that mimics the kernel's bf16/f32 numerics
    ref_bf16 = reference_forward_bf16(z, params, use_sigmoid)
    assert jnp.allclose(out, ref_bf16, atol=1e-4, rtol=1e-4), "mismatch vs bf16 reference"

    # loose check against the pure-f32 PyTorch-semantics reference
    ref_f32 = reference_forward_f32(z, params, use_sigmoid)
    assert jnp.allclose(out, ref_f32, atol=3e-2, rtol=3e-2), "mismatch vs f32 reference"

    print("KERNEL_OK")
</pallas_src>

<mosaic_0001>
module attributes {stable_mosaic.version = 11 : i64} {
  func.func @supermask_mlp_kernel(%arg0: i32, %arg1: memref<16x128xbf16, #tpu.memory_space<vmem>>, %arg2: memref<4x128x128xbf16, #tpu.memory_space<vmem>>, %arg3: memref<4x128xf32, #tpu.memory_space<vmem>>, %arg4: memref<16x128xf32, #tpu.memory_space<vmem>>) attributes {dimension_semantics = [#tpu.dimension_semantics<parallel>], iteration_bounds = array<i64: 1>, scalar_prefetch = 0 : i64, scratch_operands = 0 : i64, tpu.core_type = #tpu.core_type<tc>, window_params = [{transform_indices = @transform_0, window_bounds = array<i64: 16, 128>}, {pipeline_mode = #tpu.pipeline_mode<synchronous>, transform_indices = @transform_1, window_bounds = array<i64: 4, 128, 128>}, {pipeline_mode = #tpu.pipeline_mode<synchronous>, transform_indices = @transform_2, window_bounds = array<i64: 4, 128>}, {transform_indices = @transform_3, window_bounds = array<i64: 16, 128>}]} {
    %c0 = arith.constant 0 : index
    %c0_0 = arith.constant 0 : index
    %0 = vector.load %arg1[%c0, %c0_0] : memref<16x128xbf16, #tpu.memory_space<vmem>>, vector<16x128xbf16>
    %c0_1 = arith.constant 0 : index
    %c0_2 = arith.constant 0 : index
    %c0_3 = arith.constant 0 : index
    %1 = vector.load %arg2[%c0_1, %c0_2, %c0_3] : memref<4x128x128xbf16, #tpu.memory_space<vmem>>, vector<1x128x128xbf16>
    %2 = vector.shape_cast %1 : vector<1x128x128xbf16> to vector<128x128xbf16>
    %cst = arith.constant dense<0.000000e+00> : vector<16x128xf32>
    %3 = tpu.matmul %0, %2, %cst {dimension_numbers = #tpu.dot_dimension_numbers<[1], [0], [0], [1], [0, 0, 1, 1], [], []>} : vector<16x128xbf16>, vector<128x128xbf16>, vector<16x128xf32> -> vector<16x128xf32>
    %c0_4 = arith.constant 0 : index
    %c0_5 = arith.constant 0 : index
    %4 = vector.load %arg3[%c0_4, %c0_5] : memref<4x128xf32, #tpu.memory_space<vmem>>, vector<1x128xf32>
    %5 = vector.broadcast %4 : vector<1x128xf32> to vector<16x128xf32>
    %6 = arith.addf %3, %5 : vector<16x128xf32>
    %cst_6 = arith.constant 0.000000e+00 : f32
    %7 = vector.broadcast %cst_6 : f32 to vector<16x128xf32>
    %8 = arith.maximumf %6, %7 : vector<16x128xf32>
    %9 = arith.truncf %8 : vector<16x128xf32> to vector<16x128xbf16>
    %c1 = arith.constant 1 : index
    %c0_7 = arith.constant 0 : index
    %c0_8 = arith.constant 0 : index
    %10 = vector.load %arg2[%c1, %c0_7, %c0_8] : memref<4x128x128xbf16, #tpu.memory_space<vmem>>, vector<1x128x128xbf16>
    %11 = vector.shape_cast %10 : vector<1x128x128xbf16> to vector<128x128xbf16>
    %cst_9 = arith.constant dense<0.000000e+00> : vector<16x128xf32>
    %12 = tpu.matmul %9, %11, %cst_9 {dimension_numbers = #tpu.dot_dimension_numbers<[1], [0], [0], [1], [0, 0, 1, 1], [], []>} : vector<16x128xbf16>, vector<128x128xbf16>, vector<16x128xf32> -> vector<16x128xf32>
    %c1_10 = arith.constant 1 : index
    %c0_11 = arith.constant 0 : index
    %13 = vector.load %arg3[%c1_10, %c0_11] : memref<4x128xf32, #tpu.memory_space<vmem>>, vector<1x128xf32>
    %14 = vector.broadcast %13 : vector<1x128xf32> to vector<16x128xf32>
    %15 = arith.addf %12, %14 : vector<16x128xf32>
    %cst_12 = arith.constant 0.000000e+00 : f32
    %16 = vector.broadcast %cst_12 : f32 to vector<16x128xf32>
    %17 = arith.maximumf %15, %16 : vector<16x128xf32>
    %18 = arith.truncf %17 : vector<16x128xf32> to vector<16x128xbf16>
    %c2 = arith.constant 2 : index
    %c0_13 = arith.constant 0 : index
    %c0_14 = arith.constant 0 : index
    %19 = vector.load %arg2[%c2, %c0_13, %c0_14] : memref<4x128x128xbf16, #tpu.memory_space<vmem>>, vector<1x128x128xbf16>
    %20 = vector.shape_cast %19 : vector<1x128x128xbf16> to vector<128x128xbf16>
    %cst_15 = arith.constant dense<0.000000e+00> : vector<16x128xf32>
    %21 = tpu.matmul %18, %20, %cst_15 {dimension_numbers = #tpu.dot_dimension_numbers<[1], [0], [0], [1], [0, 0, 1, 1], [], []>} : vector<16x128xbf16>, vector<128x128xbf16>, vector<16x128xf32> -> vector<16x128xf32>
    %c2_16 = arith.constant 2 : index
    %c0_17 = arith.constant 0 : index
    %22 = vector.load %arg3[%c2_16, %c0_17] : memref<4x128xf32, #tpu.memory_space<vmem>>, vector<1x128xf32>
    %23 = vector.broadcast %22 : vector<1x128xf32> to vector<16x128xf32>
    %24 = arith.addf %21, %23 : vector<16x128xf32>
    %cst_18 = arith.constant 0.000000e+00 : f32
    %25 = vector.broadcast %cst_18 : f32 to vector<16x128xf32>
    %26 = arith.maximumf %24, %25 : vector<16x128xf32>
    %27 = arith.truncf %26 : vector<16x128xf32> to vector<16x128xbf16>
    %c3 = arith.constant 3 : index
    %c0_19 = arith.constant 0 : index
    %c0_20 = arith.constant 0 : index
    %28 = vector.load %arg2[%c3, %c0_19, %c0_20] : memref<4x128x128xbf16, #tpu.memory_space<vmem>>, vector<1x128x128xbf16>
    %29 = vector.shape_cast %28 : vector<1x128x128xbf16> to vector<128x128xbf16>
    %cst_21 = arith.constant dense<0.000000e+00> : vector<16x128xf32>
    %30 = tpu.matmul %27, %29, %cst_21 {dimension_numbers = #tpu.dot_dimension_numbers<[1], [0], [0], [1], [0, 0, 1, 1], [], []>} : vector<16x128xbf16>, vector<128x128xbf16>, vector<16x128xf32> -> vector<16x128xf32>
    %c3_22 = arith.constant 3 : index
    %c0_23 = arith.constant 0 : index
    %31 = vector.load %arg3[%c3_22, %c0_23] : memref<4x128xf32, #tpu.memory_space<vmem>>, vector<1x128xf32>
    %32 = vector.broadcast %31 : vector<1x128xf32> to vector<16x128xf32>
    %33 = arith.addf %30, %32 : vector<16x128xf32>
    %34 = arith.negf %33 : vector<16x128xf32>
    %35 = math.exp %34 : vector<16x128xf32>
    %cst_24 = arith.constant 1.000000e+00 : f32
    %36 = vector.broadcast %cst_24 : f32 to vector<16x128xf32>
    %37 = arith.addf %36, %35 : vector<16x128xf32>
    %38 = arith.divf %36, %37 : vector<16x128xf32>
    %c0_25 = arith.constant 0 : index
    %c0_26 = arith.constant 0 : index
    %39 = vector.load %arg4[%c0_25, %c0_26] : memref<16x128xf32, #tpu.memory_space<vmem>>, vector<16x128xf32>
    tpu.vector_store %arg4[%c0_25, %c0_26], %38 {strides = array<i32>} : memref<16x128xf32, #tpu.memory_space<vmem>>, vector<16x128xf32>,
    return
  }
  func.func @transform_0(%arg0: i32) -> (i32, i32) {
    %c0_i32 = arith.constant 0 : i32
    %c0_i32_0 = arith.constant 0 : i32
    return %arg0, %c0_i32 : i32, i32
  }
  func.func @transform_1(%arg0: i32) -> (i32, i32, i32) {
    %c0_i32 = arith.constant 0 : i32
    %c0_i32_0 = arith.constant 0 : i32
    %c0_i32_1 = arith.constant 0 : i32
    %c0_i32_2 = arith.constant 0 : i32
    return %c0_i32, %c0_i32_0, %c0_i32_1 : i32, i32, i32
  }
  func.func @transform_2(%arg0: i32) -> (i32, i32) {
    %c0_i32 = arith.constant 0 : i32
    %c0_i32_0 = arith.constant 0 : i32
    %c0_i32_1 = arith.constant 0 : i32
    return %c0_i32, %c0_i32_0 : i32, i32
  }
  func.func @transform_3(%arg0: i32) -> (i32, i32) {
    %c0_i32 = arith.constant 0 : i32
    %c0_i32_0 = arith.constant 0 : i32
    return %arg0, %c0_i32 : i32, i32
  }
}

</mosaic_0001>

<bundles_post_ra>
// kernel: tpu_custom_call.1
= control target key start
LH: loop header
LB: loop body
LE: loop exit
PB: predicated region body
PF: predicated region fallthrough
CT: control target
= control target key end

     0   :  { %8 = vsyncpa [#allocation3], 0  ;;  %s789_s0 = inlined_call_operand.hbm [shape: bf16[16,128], index: 0, kind: input, shape index: {}]   ;;  %s790_s1 = inlined_call_operand.hbm [shape: bf16[4,128,128], index: 1, kind: input, shape index: {}]   ;;  %s791_s2 = inlined_call_operand.hbm [shape: f32[4,128], index: 2, kind: input, shape index: {}]   ;;  %s792_s3 = inlined_call_operand.hbm [shape: f32[16,128], index: 3, kind: output, shape index: {}]  }
   0x1   :  { %9 = vsyncpa [#allocation6], 0 }
   0x2   :  { %10 = vsyncpa [#allocation4], 0  ;;  %s28_s14 = sshll.u32 %s790_s1, 4  ;;  %s749_s15 = smov [#allocation5]   ;;  %s29_s14 = int_to_ptr.hbm [resolvable:$true] %s28_s14 }
   0x3   :  { %s30_s16 = sshll.u32 %s749_s15, 4  ;;  %s15_s19 = sshll.u32 %s789_s0, 4  ;;  %s31_s16 = int_to_ptr.vmem [resolvable:$true] %s30_s16  ;;  %s16_s19 = int_to_ptr.hbm [resolvable:$true] %s15_s19 }
   0x4   :  { %s750_s20 = smov 64   ;;  %s751_s21 = smov 4  }
   0x5   :  { %36 = dma.hbm_to_vmem [thread:$0]  %s29_s14, 4096, %s31_s16, [#allocation6], %s750_s20, %s750_s20, %s751_s21  }
   0x6   :  { %s752_s22 = smov [#allocation2]   ;;  %s42_s26 = sshll.u32 %s791_s2, 4  ;;  %s43_s26 = int_to_ptr.hbm [resolvable:$true] %s42_s26 }
   0x7   :  { %s17_s23 = sshll.u32 %s752_s22, 4  ;;  %s753_s1 = smov [#allocation7]   ;;  %s18_s23 = int_to_ptr.vmem [resolvable:$true] %s17_s23 }
   0x8   :  { %23 = dma.hbm_to_vmem [thread:$0]  %s16_s19, 128, %s18_s23, [#allocation3], %s750_s20, %s750_s20, %s751_s21  }
   0x9   :  { %s44_s27 = sshll.u32 %s753_s1, 4  ;;  %s45_s27 = int_to_ptr.vmem [resolvable:$true] %s44_s27 }
   0xa   :  { %47 = dma.hbm_to_vmem [thread:$0]  %s43_s26, 64, %s45_s27, [#allocation6]  }
   0xb   :  { %743 = dma.done.wait [#allocation3], 128  }
   0xc   :  { %744 = vsyncadd [#allocation3], 4294967168 }
   0xd   :  { %745 = dma.done.wait [#allocation6], 4160  }
   0xe   :  { %746 = vsyncadd [#allocation6], 4294963136  ;;  %v602_v0 = vld [vmem:[#allocation5 + $0x38] sm:$0xff]  ;;  %v601_v1 = vld [vmem:[#allocation5 + $0x30] sm:$0xff]  ;;  %s754_s0 = smov [#allocation8]   ;;  %s446_s30 = sshll.u32 %s792_s3, 4  ;;  %s447_s30 = int_to_ptr.hbm [resolvable:$true] %s446_s30 }
   0xf   :  { %134 = vmatpush.bf16.msra.mxu0 %v602_v0  ;;  %v610_v2 = vld [vmem:[#allocation5 + $0x78] sm:$0xff]  ;;  %v609_v3 = vld [vmem:[#allocation5 + $0x70] sm:$0xff]  ;;  %v600_v4 = vld [vmem:[#allocation5 + $0x28] sm:$0xff]  ;;  %s444_s2 = sshll.u32 %s754_s0, 4  ;;  %s755_s4 = smov 128   ;;  %s445_s2 = int_to_ptr.vmem [resolvable:$true] %s444_s2 }
  0x10   :  { %218 = vmatpush.bf16.msra.mxu1 %v610_v2  ;;  %v608_v5 = vld [vmem:[#allocation5 + $0x68] sm:$0xff]  ;;  %v599_v6 = vld [vmem:[#allocation5 + $0x20] sm:$0xff]  ;;  %v598_v8 = vld [vmem:[#allocation5 + $0x18] sm:$0xff]  ;;  %s756_s5 = smov 8  }
  0x11   :  { %v607_v7 = vld [vmem:[#allocation5 + $0x60] sm:$0xff]  ;;  %v597_v9 = vld [vmem:[#allocation5 + $0x10] sm:$0xff]  ;;  %v596_v10 = vld [vmem:[#allocation5 + $0x8] sm:$0xff] }
  0x12   :  { %v595_v11 = vld [vmem:[#allocation5] sm:$0xff]  ;;  %v594_v12 = vld [vmem:[#allocation2] sm:$0xff]  ;;  %v605_v14 = vld [vmem:[#allocation5 + $0x50] sm:$0xff] }
  0x13   :  { %135 = vmatpush.bf16.msra.mxu0 %v601_v1  ;;  %v606_v13 = vld [vmem:[#allocation5 + $0x58] sm:$0xff]  ;;  %v604_v15 = vld [vmem:[#allocation5 + $0x48] sm:$0xff]  ;;  %v603_v16 = vld [vmem:[#allocation5 + $0x40] sm:$0xff] }
  0x14   :  { %219 = vmatpush.bf16.msra.mxu1 %v609_v3  ;;  %v618_v17 = vld [vmem:[#allocation5 + $0xb8] sm:$0xff]  ;;  %v617_v18 = vld [vmem:[#allocation5 + $0xb0] sm:$0xff]  ;;  %v616_v19 = vld [vmem:[#allocation5 + $0xa8] sm:$0xff] }
  0x15   :  { %302 = vmatpush.bf16.msra.mxu2 %v618_v17  ;;  %v615_v20 = vld [vmem:[#allocation5 + $0xa0] sm:$0xff]  ;;  %v614_v29 = vld [vmem:[#allocation5 + $0x98] sm:$0xff]  ;;  %v613_v30 = vld [vmem:[#allocation5 + $0x90] sm:$0xff] }
  0x16   :  { %v635_v22 = vld [vmem:[#allocation7] ss:$0 sm:$0xff]  ;;  %v612_v31 = vld [vmem:[#allocation5 + $0x88] sm:$0xff]  ;;  %v626_v33 = vld [vmem:[#allocation5 + $0xf8] sm:$0xff] }
  0x17   :  { %136 = vmatpush.bf16.msra.mxu0 %v600_v4  ;;  %v611_v32 = vld [vmem:[#allocation5 + $0x80] sm:$0xff]  ;;  %386 = vmatpush.bf16.msra.mxu3 %v626_v33  ;;  %v625_v34 = vld [vmem:[#allocation5 + $0xf0] sm:$0xff]  ;;  %v624_v35 = vld [vmem:[#allocation5 + $0xe8] sm:$0xff] }
  0x18   :  { %220 = vmatpush.bf16.msra.mxu1 %v608_v5  ;;  %v623_v36 = vld [vmem:[#allocation5 + $0xe0] sm:$0xff]  ;;  %v622_v45 = vld [vmem:[#allocation5 + $0xd8] sm:$0xff]  ;;  %v621_v46 = vld [vmem:[#allocation5 + $0xd0] sm:$0xff] }
  0x19   :  { %303 = vmatpush.bf16.msra.mxu2 %v617_v18  ;;  %v636_v38 = vld [vmem:[#allocation7 + $0x1] ss:$0 sm:$0xff]  ;;  %v620_v47 = vld [vmem:[#allocation5 + $0xc8] sm:$0xff]  ;;  %v637_v50 = vld [vmem:[#allocation7 + $0x2] ss:$0 sm:$0xff] }
  0x1a   :  { %v619_v48 = vld [vmem:[#allocation5 + $0xc0] sm:$0xff] }
  0x1b   :  { %137 = vmatpush.bf16.msra.mxu0 %v599_v6  ;;  %387 = vmatpush.bf16.msra.mxu3 %v625_v34  ;;  %v638_v57 = vld [vmem:[#allocation7 + $0x3] ss:$0 sm:$0xff] }
  0x1c   :  { %221 = vmatpush.bf16.msra.mxu1 %v607_v7 }
  0x1d   :  { %304 = vmatpush.bf16.msra.mxu2 %v616_v19 }
  0x1f   :  { %138 = vmatpush.bf16.msra.mxu0 %v598_v8  ;;  %388 = vmatpush.bf16.msra.mxu3 %v624_v35 }
  0x20   :  { %222 = vmatpush.bf16.msra.mxu1 %v606_v13 }
  0x21   :  { %305 = vmatpush.bf16.msra.mxu2 %v615_v20 }
  0x23   :  { %139 = vmatpush.bf16.msra.mxu0 %v597_v9  ;;  %389 = vmatpush.bf16.msra.mxu3 %v623_v36 }
  0x24   :  { %223 = vmatpush.bf16.msra.mxu1 %v605_v14 }
  0x25   :  { %306 = vmatpush.bf16.msra.mxu2 %v614_v29 }
  0x27   :  { %140 = vmatpush.bf16.msra.mxu0 %v596_v10  ;;  %390 = vmatpush.bf16.msra.mxu3 %v622_v45 }
  0x28   :  { %224 = vmatpush.bf16.msra.mxu1 %v604_v15 }
  0x29   :  { %307 = vmatpush.bf16.msra.mxu2 %v613_v30 }
  0x2b   :  { %141 = vmatpush.bf16.msra.mxu0 %v595_v11  ;;  %391 = vmatpush.bf16.msra.mxu3 %v621_v46 }
  0x2c   :  { %225 = vmatpush.bf16.msra.mxu1 %v603_v16 }
  0x2d   :  { %308 = vmatpush.bf16.msra.mxu2 %v612_v31 }
  0x2e   :  { %142 = vmatmul.bf16.vlgmr.msra.gmra.mxu0 %v594_v12 }
  0x2f   :  { %392 = vmatpush.bf16.msra.mxu3 %v620_v47 }
  0x31   :  { %309 = vmatpush.bf16.msra.mxu2 %v611_v32 }
  0x33   :  { %393 = vmatpush.bf16.msra.mxu3 %v619_v48 }
  0xab   :  { %v143_v21 = vpop.f32.mrf.mxu0 }
  0xac   :  { %v144_v23 = vadd.f32 %v635_v22, %v143_v21 }
  0xae   :  { %v148_v26 = vmax.f32 %v144_v23, 0.0 }
  0xb3   :  { %v145_v24 = vpop.f32.mrf.mxu0 }
  0xb4   :  { %v146_v25 = vadd.f32 %v635_v22, %v145_v24 }
  0xb6   :  { %v149_v27 = vmax.f32 %v146_v25, 0.0 }
  0xb8   :  { %v150_v28 = vpack.c.bf16 %v149_v27, %v148_v26 }
  0xba   :  { %226 = vmatmul.bf16.vlgmr.msra.gmra.mxu1 %v150_v28 }
 0x137   :  { %v227_v37 = vpop.f32.mrf.mxu1 }
 0x138   :  { %v228_v39 = vadd.f32 %v636_v38, %v227_v37 }
 0x13a   :  { %v232_v42 = vmax.f32 %v228_v39, 0.0 }
 0x13f   :  { %v229_v40 = vpop.f32.mrf.mxu1 }
 0x140   :  { %v230_v41 = vadd.f32 %v636_v38, %v229_v40 }
 0x142   :  { %v233_v43 = vmax.f32 %v230_v41, 0.0 }
 0x144   :  { %v234_v44 = vpack.c.bf16 %v233_v43, %v232_v42 }
 0x146   :  { %310 = vmatmul.bf16.vlgmr.msra.gmra.mxu2 %v234_v44 }
 0x1c9   :  { %v311_v49 = vpop.f32.mrf.mxu2 }
 0x1ca   :  { %v312_v51 = vadd.f32 %v637_v50, %v311_v49 }
 0x1cc   :  { %v316_v54 = vmax.f32 %v312_v51, 0.0 }
 0x1d1   :  { %v313_v52 = vpop.f32.mrf.mxu2 }
 0x1d2   :  { %v314_v53 = vadd.f32 %v637_v50, %v313_v52 }
 0x1d4   :  { %v317_v55 = vmax.f32 %v314_v53, 0.0 }
 0x1d6   :  { %v318_v56 = vpack.c.bf16 %v317_v55, %v316_v54 }
 0x1d8   :  { %394 = vmatmul.bf16.vlgmr.msra.gmra.mxu3 %v318_v56 }
 0x25b   :  { %v395_v58 = vpop.f32.mrf.mxu3 }
 0x25c   :  { %v396_v59 = vadd.f32 %v638_v57, %v395_v58 }
 0x25e   :  { %v592_v60 = vmul.f32 -1.442695, %v396_v59 }
 0x260   :  { %639 = vpow2.f32 %v592_v60 }
 0x263   :  { %v397_v61 = vpop.f32.mrf.mxu3 }
 0x264   :  { %v398_v62 = vadd.f32 %v638_v57, %v397_v61 }
 0x266   :  { %v640_v63 = vpop.eup %639  ;;  %v593_v0 = vmul.f32 -1.442695, %v398_v62 }
 0x267   :  { %v406_v1 = vadd.f32 1.0, %v640_v63 }
 0x268   :  { %641 = vpow2.f32 %v593_v0 }
 0x269   :  { %643 = vrcp.f32 %v406_v1  ;;  %v419_v7 = vand.u32 2147483648, %v406_v1  ;;  %v417_v9 = vand.u32 2147483647, %v406_v1  ;;  %vm413_vm1 = vweird.f32 %v406_v1 }
 0x26b   :  { %v420_v12 = vor.u32 1.1754944e-38, %v419_v7  ;;  %vm418_vm3 = vcmp.eq.f32.partialorder %v417_v9, 8.507059e+37 }
 0x26e   :  { %v642_v2 = vpop.eup %641 }
 0x26f   :  { %v644_v3 = vpop.eup %643  ;;  %v407_v4 = vadd.f32 1.0, %v642_v2 }
 0x270   :  { %v409_v5 = vmul.f32 %v644_v3, %v406_v1  ;;  %vm414_vm0 = vweird.f32 %v644_v3 }
 0x271   :  { %645 = vrcp.f32 %v407_v4  ;;  %vm415_vm2 = vmor %vm413_vm1, %vm414_vm0  ;;  %v434_v17 = vand.u32 2147483648, %v407_v4  ;;  %v432_v19 = vand.u32 2147483647, %v407_v4  ;;  %vm428_vm5 = vweird.f32 %v407_v4 }
 0x272   :  { %v410_v6 = vsub.f32 1.0, %v409_v5 }
 0x273   :  { %v435_v21 = vor.u32 1.1754944e-38, %v434_v17  ;;  %vm433_vm7 = vcmp.eq.f32.partialorder %v432_v19, 8.507059e+37 }
 0x274   :  { %v411_v8 = vmul.f32 %v644_v3, %v410_v6 }
 0x276   :  { %v412_v10 = vadd.f32 %v644_v3, %v411_v8 }
 0x277   :  { %v646_v11 = vpop.eup %645 }
 0x278   :  { %v424_v13 = vmul.f32 %v646_v11, %v407_v4  ;;  %v416_v14 = vsel %vm415_vm2, %v644_v3, %v412_v10  ;;  %vm429_vm4 = vweird.f32 %v646_v11 }
 0x279   :  { %v421_v15 = vsel %vm418_vm3, %v420_v12, %v416_v14  ;;  %vm430_vm6 = vmor %vm428_vm5, %vm429_vm4 }
 0x27a   :  { %v425_v16 = vsub.f32 1.0, %v424_v13  ;;  %438 = vst [vmem:[#allocation8] sm:$0xff] %v421_v15 }
 0x27c   :  { %v426_v18 = vmul.f32 %v646_v11, %v425_v16 }
 0x27e   :  { %v427_v20 = vadd.f32 %v646_v11, %v426_v18 }
 0x280   :  { %v431_v22 = vsel %vm430_vm6, %v646_v11, %v427_v20 }
 0x281   :  { %v436_v23 = vsel %vm433_vm7, %v435_v21, %v431_v22 }
 0x282   :  { %439 = vst [vmem:[#allocation8 + $0x8] sm:$0xff] %v436_v23 }
 0x283   :  { %452 = dma.vmem_to_hbm [thread:$0]  %s445_s2, 256, %s447_s30, [#allocation4], %s755_s4, %s755_s4, %s756_s5  }
 0x284   :  { %747 = dma.done.wait [#allocation4], 256  }
 0x285   :  { %748 = vsyncadd [#allocation4], 4294967040 }
 0x286   :  { %457 = vsyncpa [#allocation3], 1 }
 0x287   :  { %458 = vsyncpa [#allocation6], 1 }
 0x288   :  { %459 = vsyncpa [#allocation4], 1 }

</bundles_post_ra>
